<compile_context>
chip_gen: v7x
topology: tpu7x:2x2x1
jax: 0.10.0
libtpu: 0.0.40
codegen_flags: <defaults>
</compile_context>

<pallas_src>
import math

import jax
import jax.numpy as jnp
from jax.experimental import pallas as pl
from jax.experimental.pallas import tpu as pltpu


_LANE_CHOICES = (2048, 1024, 512, 256, 128)
_TARGET_TILE_BYTES = 6 << 20    # ~6 MiB per tile -> 4 double-buffered bufs = 24 MiB
_VMEM_LIMIT_BYTES = 32 << 20    # legal scoped limit on v5e/v6e/v7x (>= 4 x tile)
_MIN_GRID_STEPS = 4             # keep a few steps so the pipeline overlaps / 2 TCs share
_MIN_PALLAS_BYTES = 1 << 20     # below this, a plain fused multiply beats a custom call

_CORE_PARALLEL = getattr(pltpu, "CORE_PARALLEL", None)
_core_parallel_supported = None  # memoized probe result


def _pick_lanes(n: int) -> int:
    """Largest lane-dense width (multiple of 128) that divides n exactly."""
    for lanes in _LANE_CHOICES:
        if n % lanes == 0:
            return lanes
    return 128  # callers only pass n that is a multiple of 128


def _sublane_rows(dtype) -> int:
    """Native sublane tile: 8 for 4-byte, 16 for 2-byte, 32 for 1-byte dtypes."""
    return max(8, 32 // jnp.dtype(dtype).itemsize)


def _largest_divisor_block(rows: int, block_rows: int, sub: int) -> int | None:
    """Largest multiple of `sub` that is <= block_rows and divides rows."""
    b = (block_rows // sub) * sub
    while b >= sub:
        if rows % b == 0:
            return b
        b -= sub
    return None


def _scale_kernel(coef: float):
    def kernel(v_ref, o_ref):
        # f32 math; exact for f32 params, avoids a rounded coefficient for bf16.
        o_ref[...] = (v_ref[...].astype(jnp.float32) * coef).astype(o_ref.dtype)
    return kernel


def _core_parallel_ok() -> bool:
    """One-time probe: does this backend accept CORE_PARALLEL grid semantics?"""
    global _core_parallel_supported
    if _core_parallel_supported is None:
        try:
            def probe(x):
                return pl.pallas_call(
                    _scale_kernel(1.0),
                    out_shape=jax.ShapeDtypeStruct((16, 128), jnp.float32),
                    grid=(2,),
                    in_specs=[pl.BlockSpec((8, 128), lambda i: (i, 0))],
                    out_specs=pl.BlockSpec((8, 128), lambda i: (i, 0)),
                    compiler_params=pltpu.CompilerParams(
                        dimension_semantics=(_CORE_PARALLEL,)),
                )(x)

            jax.jit(probe).lower(
                jax.ShapeDtypeStruct((16, 128), jnp.float32)).compile()
            _core_parallel_supported = True
        except Exception:
            _core_parallel_supported = False
    return _core_parallel_supported


def _scale_slab(slab: jax.Array, coef: float, block_rows: int) -> jax.Array:
    """Run the elementwise-scale Pallas kernel over a lane-dense (rows, lanes) slab."""
    rows, lanes = slab.shape
    dtype = slab.dtype
    itemsize = jnp.dtype(dtype).itemsize
    grid_steps = pl.cdiv(rows, block_rows)

    # Shard rows across TensorCores on chips with >1 TC (v7x): plain "parallel"
    # does not change codegen, only CORE_PARALLEL does.  Probe once; fall back
    # to "parallel" if the backend rejects it.  Single-step grids gain nothing.
    semantics = "arbitrary"
    if grid_steps >= 2:
        if _CORE_PARALLEL is not None and _core_parallel_ok():
            semantics = _CORE_PARALLEL
        else:
            semantics = "parallel"

    n = rows * lanes
    return pl.pallas_call(
        _scale_kernel(coef),
        out_shape=jax.ShapeDtypeStruct((rows, lanes), dtype),
        grid=(grid_steps,),
        in_specs=[pl.BlockSpec((block_rows, lanes), lambda i: (i, 0))],
        out_specs=pl.BlockSpec((block_rows, lanes), lambda i: (i, 0)),
        compiler_params=pltpu.CompilerParams(
            dimension_semantics=(semantics,),
            vmem_limit_bytes=_VMEM_LIMIT_BYTES,
        ),
        # Advisory: helps XLA schedule/overlap the custom call with neighbors.
        cost_estimate=pl.CostEstimate(
            flops=n, transcendentals=0, bytes_accessed=2 * n * itemsize),
    )(slab)


def sparameter_forward(value: jax.Array, init: float, scale: float,
                       *, min_pallas_bytes: int = _MIN_PALLAS_BYTES) -> jax.Array:
    """Compute value * init / scale (the SParameter forward) with a Pallas kernel."""
    coef = float(init) / float(scale)  # trace-time constant, full precision
    dtype = value.dtype
    orig_shape = value.shape
    n = value.size
    itemsize = jnp.dtype(dtype).itemsize

    def _plain(x):
        return (x.astype(jnp.float32) * coef).astype(dtype)

    # Small parameters: fixed per-call + per-step overhead dominates, and XLA
    # fuses the scalar multiply into the consumer for free.
    if n * itemsize < min_pallas_bytes or n < 128:
        return _plain(value)

    flat = value.reshape(-1)

    # Non-128-divisible sizes: run the kernel on the largest 128-divisible
    # prefix and scale the (<128-element) tail with plain jnp.  This replaces
    # the old jnp.pad fallback, which paid a full extra HBM read+write of the
    # parameter before the kernel even started.
    rem = n % 128
    main_n = n - rem
    main = flat[:main_n] if rem else flat

    lanes = _pick_lanes(main_n)
    rows = main_n // lanes
    slab = main.reshape(rows, lanes)

    # Tile sizing: as big as the VMEM budget allows (amortizes ~0.35 us/step),
    # rounded to the dtype's native sublane tile, but capped so large params
    # still have >= _MIN_GRID_STEPS grid steps (pipelining + 2-TC sharding).
    sub = _sublane_rows(dtype)
    bytes_per_row = lanes * itemsize
    tgt_rows = max(sub, (_TARGET_TILE_BYTES // bytes_per_row) // sub * sub)
    cap_rows = max(sub, (rows // _MIN_GRID_STEPS) // sub * sub)
    block_rows = min(tgt_rows, cap_rows)
    if block_rows >= rows:
        block_rows = rows  # single full tile (block == full dims is always legal)
    else:
        # Prefer a divisor of rows so the last tile isn't ragged / masked,
        # unless that would shrink the tile by more than 2x.
        div = _largest_divisor_block(rows, block_rows, sub)
        if div is not None and 2 * div >= block_rows:
            block_rows = div

    out_flat = _scale_slab(slab, coef, block_rows).reshape(-1)
    if rem:
        out_flat = jnp.concatenate([out_flat, _plain(flat[main_n:])])
    return out_flat.reshape(orig_shape)


class SParameterJax:
    """JAX mirror of the PyTorch SParameter module (forward pass)."""

    def __init__(self, values: jax.Array, init: float = 1.0,
                 scale: float | None = None) -> None:
        if scale is None:
            scale = 1.0 / math.sqrt(values.shape[-1])
        self.value = values * scale          # stored (pre-scaled) parameter
        self.scale = float(scale)
        self.init = float(init)

    def forward(self) -> jax.Array:
        return sparameter_forward(self.value, self.init, self.scale)

    # TODO(synk): eff_clamp_ mutates an nn.Parameter in place; provided here as a
    # pure-functional JAX helper that reassigns self.value (no Pallas kernel needed).
    def eff_clamp(self, min_: float, max_: float) -> None:
        lo = min_ * self.scale / self.init
        hi = max_ * self.scale / self.init
        self.value = jnp.clip(self.value, lo, hi)


if __name__ == "__main__":
    key = jax.random.PRNGKey(0)

    # Small demo shape consistent with the module (hidden=32).
    rows, hidden = 16, 32
    values = jax.random.normal(key, (rows, hidden), dtype=jnp.float32)
    module = SParameterJax(values, init=1.0, scale=None)

    # 1) Default path: tiny parameter -> size-based bypass (plain fused multiply).
    out = jax.block_until_ready(module.forward())
    ref = module.value * module.init / module.scale
    assert out.shape == (rows, hidden)
    assert jnp.allclose(out, ref, atol=1e-6), "bypass path mismatch vs reference"
    assert jnp.allclose(out, values, atol=1e-6), "bypass path mismatch vs original values"

    # 2) Force the Pallas path on the same small parameter (single-tile grid).
    out_k = jax.block_until_ready(
        sparameter_forward(module.value, module.init, module.scale,
                           min_pallas_bytes=0))
    assert jnp.allclose(out_k, ref, atol=1e-6), "pallas path mismatch vs reference"

    # 3) Non-128-divisible total size exercises the prefix + plain-tail path.
    vals2 = jax.random.normal(jax.random.PRNGKey(1), (8, 33), dtype=jnp.float32)
    mod2 = SParameterJax(vals2, init=2.0)
    out2 = jax.block_until_ready(
        sparameter_forward(mod2.value, mod2.init, mod2.scale, min_pallas_bytes=0))
    ref2 = mod2.value * mod2.init / mod2.scale
    assert out2.shape == (8, 33)
    assert jnp.allclose(out2, ref2, atol=1e-5), "prefix+tail path mismatch"

    # 4) Multi-step grid exercises the ragged-last-tile + core-parallel machinery.
    vals3 = jax.random.normal(jax.random.PRNGKey(2), (36, 32), dtype=jnp.float32)
    mod3 = SParameterJax(vals3, init=1.0)
    out3 = jax.block_until_ready(
        sparameter_forward(mod3.value, mod3.init, mod3.scale, min_pallas_bytes=0))
    ref3 = mod3.value * mod3.init / mod3.scale
    assert out3.shape == (36, 32)
    assert jnp.allclose(out3, ref3, atol=1e-6), "multi-step grid path mismatch"

    print("KERNEL_OK")
</pallas_src>

<mosaic_0001>
module attributes {stable_mosaic.version = 11 : i64} {
  func.func @kernel(%arg0: i32, %arg1: memref<1x512xf32, #tpu.memory_space<vmem>>, %arg2: memref<1x512xf32, #tpu.memory_space<vmem>>) attributes {dimension_semantics = [#tpu.dimension_semantics<arbitrary>], iteration_bounds = array<i64: 1>, scalar_prefetch = 0 : i64, scratch_operands = 0 : i64, tpu.core_type = #tpu.core_type<tc>, window_params = [{transform_indices = @transform_0, window_bounds = array<i64: 1, 512>}, {transform_indices = @transform_1, window_bounds = array<i64: 1, 512>}]} {
    %c0 = arith.constant 0 : index
    %c0_0 = arith.constant 0 : index
    %0 = vector.load %arg1[%c0, %c0_0] : memref<1x512xf32, #tpu.memory_space<vmem>>, vector<1x512xf32>
    %cst = arith.constant 5.65685415 : f32
    %1 = vector.broadcast %cst : f32 to vector<1x512xf32>
    %2 = arith.mulf %0, %1 : vector<1x512xf32>
    %c0_1 = arith.constant 0 : index
    %c0_2 = arith.constant 0 : index
    %3 = vector.load %arg2[%c0_1, %c0_2] : memref<1x512xf32, #tpu.memory_space<vmem>>, vector<1x512xf32>
    tpu.vector_store %arg2[%c0_1, %c0_2], %2 {strides = array<i32>} : memref<1x512xf32, #tpu.memory_space<vmem>>, vector<1x512xf32>,
    return
  }
  func.func @transform_0(%arg0: i32) -> (i32, i32) {
    %c0_i32 = arith.constant 0 : i32
    %c0_i32_0 = arith.constant 0 : i32
    return %arg0, %c0_i32 : i32, i32
  }
  func.func @transform_1(%arg0: i32) -> (i32, i32) {
    %c0_i32 = arith.constant 0 : i32
    %c0_i32_0 = arith.constant 0 : i32
    return %arg0, %c0_i32 : i32, i32
  }
}

</mosaic_0001>

<bundles_post_ra>
// kernel: tpu_custom_call.1
= control target key start
LH: loop header
LB: loop body
LE: loop exit
PB: predicated region body
PF: predicated region fallthrough
CT: control target
= control target key end

     0   :  { %6 = vsyncpa [#allocation3], 0  ;;  %s129_s0 = inlined_call_operand.hbm [shape: f32[1,512], index: 0, kind: input, shape index: {}]   ;;  %s130_s1 = inlined_call_operand.hbm [shape: f32[1,512], index: 1, kind: output, shape index: {}]  }
   0x1   :  { %7 = vsyncpa [#allocation4], 0  ;;  %s93_s6 = smov [#allocation2]   ;;  %s45_s10 = scalar_lea.hbm %s129_s0, 64 }
   0x2   :  { %s14_s7 = sshll.u32 %s93_s6, 4  ;;  %p46_p0 = scmp.ne.s32.totalorder %s129_s0, %s45_s10  ;;  %s15_s7 = int_to_ptr.vmem [resolvable:$true] %s14_s7 }
   0x3   :  { %p49_p1 = scmp.lt.u32.totalorder %s45_s10, %s129_s0 }
   0x5   :  { %p51_p2 = pnand %p49_p1, %p46_p0 }
   0x7   :  { %54 = shalt.err (!%p51_p2)
}
   0x8   :  { %s55_s15 = scalar_lea.vmem %s15_s7, 64  ;;  %p60_p4 = scmp.lt.s32.totalorder %s15_s7, %s15_s7 }
   0x9   :  { %p56_p3 = scmp.ne.s32.totalorder %s15_s7, %s55_s15  ;;  %p61_p5 = scmp.lt.s32.totalorder %s55_s15, %s55_s15 }
   0xb   :  { %p62_p6 = por %p61_p5, %p60_p4 }
   0xd   :  { %p63_p7 = pnand %p62_p6, %p56_p3 }
   0xf   :  { %66 = shalt.err (!%p63_p7)
}
  0x10   :  { %17 = dma.hbm_to_vmem [thread:$0]  %s129_s0, 64, %s15_s7, [#allocation3]  }
  0x11   :  { %89 = dma.done.wait [#allocation3], 64  }
  0x12   :  { %90 = vsyncadd [#allocation3], 4294967232  ;;  %v23_v0 = vlaneseq  ;;  %s94_s18 = smov [#allocation5]   ;;  %v21_v1 = vld [vmem:[#allocation2] sm:$0xf] }
  0x13   :  { %s34_s19 = sshll.u32 %s94_s18, 4  ;;  %v22_v2 = vmul.f32 5.656854, %v21_v1  ;;  %s35_s19 = int_to_ptr.vmem [resolvable:$true] %s34_s19 }
  0x14   :  { %vm25_vm0 = vcmp.lt.s32.totalorder %v23_v0, 512  ;;  %s67_s20 = scalar_lea.vmem %s35_s19, 64  ;;  %p72_p9 = scmp.lt.s32.totalorder %s35_s19, %s35_s19 }
  0x15   :  { %27 = vst.msk [vmem:[#allocation5] sm:$0xf] %vm25_vm0, %v22_v2  ;;  %p68_p8 = scmp.ne.s32.totalorder %s35_s19, %s67_s20  ;;  %p73_p10 = scmp.lt.s32.totalorder %s67_s20, %s67_s20 }
  0x17   :  { %p74_p11 = por %p73_p10, %p72_p9 }
  0x19   :  { %p75_p12 = pnand %p74_p11, %p68_p8 }
  0x1b   :  { %78 = shalt.err (!%p75_p12)
}
  0x1c   :  { %s79_s0 = scalar_lea.hbm %s130_s1, 64 }
  0x1d   :  { %p80_p13 = scmp.ne.s32.totalorder %s130_s1, %s79_s0  ;;  %p83_p0 = scmp.lt.u32.totalorder %s79_s0, %s130_s1 }
  0x1f   :  { %p85_p1 = pnand %p83_p0, %p80_p13 }
  0x21   :  { %88 = shalt.err (!%p85_p1)
}
  0x22   :  { %37 = dma.vmem_to_hbm [thread:$0]  %s35_s19, 64, %s130_s1, [#allocation4]  }
  0x23   :  { %91 = dma.done.wait [#allocation4], 64  }
  0x24   :  { %92 = vsyncadd [#allocation4], 4294967232 }
  0x25   :  { %41 = vsyncpa [#allocation3], 1 }
  0x26   :  { %42 = vsyncpa [#allocation4], 1 }

</bundles_post_ra>
